<compile_context>
chip_gen: v6e
topology: v6e:2x2x1
jax: 0.10.0
libtpu: 0.0.40
codegen_flags: <defaults>
</compile_context>

<pallas_src>
import math
import numpy as np
import jax
import jax.numpy as jnp
from jax.experimental import pallas as pl
from jax.experimental.pallas import tpu as pltpu

EPS = 1e-5
COS2 = math.cos(2.0)   # atan_threshold "A <= eps" branch: theta == 2 exactly
SIN2 = math.sin(2.0)


# ---------------------------------------------------------------------------
# Host-side spectral preprocessing (faithful port of the reference numpy code)
# ---------------------------------------------------------------------------
def jacobi(a, iterations=10):
    """Approximate eigendecomposition via classical Jacobi rotations (reference port)."""
    a = np.array(a, dtype=np.float64, copy=True)
    n = len(a)

    def maxElem(a):
        aMax, k, l = 0.0, 0, 1
        for i in range(n - 1):
            for j in range(i + 1, n):
                if abs(a[i, j]) >= aMax:
                    aMax, k, l = abs(a[i, j]), i, j
        return aMax, k, l

    def rotate(a, p, k, l):
        aDiff = a[l, l] - a[k, k]
        if abs(a[k, l]) < abs(aDiff) * 1e-36:
            t = a[k, l] / aDiff
        else:
            phi = aDiff / (2.0 * a[k, l])
            t = 1.0 / (abs(phi) + math.sqrt(phi ** 2 + 1.0))
            if phi < 0.0:
                t = -t
        c = 1.0 / math.sqrt(t ** 2 + 1.0)
        s = t * c
        tau = s / (1.0 + c)
        temp = a[k, l]
        a[k, l] = 0.0
        a[k, k] = a[k, k] - t * temp
        a[l, l] = a[l, l] + t * temp
        for i in range(k):
            temp = a[i, k]
            a[i, k] = temp - s * (a[i, l] + tau * temp)
            a[i, l] = a[i, l] + s * (temp - tau * a[i, l])
        for i in range(k + 1, l):
            temp = a[k, i]
            a[k, i] = temp - s * (a[i, l] + tau * a[k, i])
            a[i, l] = a[i, l] + s * (temp - tau * a[i, l])
        for i in range(l + 1, n):
            temp = a[k, i]
            a[k, i] = temp - s * (a[l, i] + tau * temp)
            a[l, i] = a[l, i] + s * (temp - tau * a[l, i])
        for i in range(n):
            temp = p[i, k]
            p[i, k] = temp - s * (p[i, l] + tau * p[i, k])
            p[i, l] = p[i, l] + s * (temp - tau * p[i, l])

    p = np.identity(n) * 1.0
    for _ in range(iterations):
        _, k, l = maxElem(a)
        rotate(a, p, k, l)
    return np.diagonal(a), p


def sym_laplacian_dense(edge_index, num_nodes, edge_weight=None):
    """Dense symmetric-normalized Laplacian L = I - D^{-1/2} A D^{-1/2}."""
    row, col = edge_index
    if edge_weight is None:
        edge_weight = np.ones(row.shape[0], dtype=np.float64)
    A = np.zeros((num_nodes, num_nodes), dtype=np.float64)
    np.add.at(A, (row, col), edge_weight)
    deg = A.sum(axis=1)
    dinv = np.where(deg > 0, 1.0 / np.sqrt(np.where(deg > 0, deg, 1.0)), 0.0)
    return np.eye(num_nodes) - (dinv[:, None] * A) * dinv[None, :]


# ---------------------------------------------------------------------------
# Pallas kernel: the hot path (both N x N projections + Cayley filter + mix)
# ---------------------------------------------------------------------------
def cayley_kernel(u_ref, xt_ref, w_ref, h_ref, rw_ref, iw_ref, c_ref, b_ref, o_ref):
    """One grid step processes one node block (one column panel of U).

    u_ref : (Npad, tile)    bf16  U[:, blk] -- single streamed big operand
    xt_ref: (Cin, Npad)     bf16  x^T, resident across the grid
    w_ref : (1, tile)       f32   eigenvalue block
    h_ref : (Cout, Cin)     f32
    rw_ref/iw_ref: (Cout, Cin*r) f32 real/imag Cayley weights (j fastest)
    c_ref : (Cout, Cin)     f32
    b_ref : (Cout, 1)       f32   bias
    o_ref : (Cout, Npad)    f32   y^T accumulator (resident, written back at end)
    """
    kb = pl.program_id(0)
    cout, cin = h_ref.shape
    r = rw_ref.shape[1] // cin
    tile = w_ref.shape[1]

    u_blk = u_ref[...]                                             # (Npad, tile) bf16

    # First spectral projection for this node block: aux^T[:, blk] = x^T @ U[:, blk]
    aux = jnp.dot(xt_ref[...], u_blk,
                  preferred_element_type=jnp.float32)              # (Cin, tile) f32

    # Cayley filter computed on the fly from (h, w_eig):
    #   A = h*w, theta = 2*atan(1/A)  =>  cos(theta) = (A^2-1)/(A^2+1),
    #                                     sin(theta) = 2A/(A^2+1);
    #   A <= eps  =>  theta = 2 exactly (reference atan_threshold).
    w_b = jnp.broadcast_to(w_ref[...], (cout, tile))               # hoisted out of Cin loop

    out_blk = jnp.zeros((cout, tile), dtype=jnp.float32)
    for i in range(cin):                                           # Cin small & static -> unrolled
        a_i = h_ref[:, i:i + 1] * w_b                              # (Cout, tile)
        a2 = a_i * a_i
        d = a2 + 1.0                                               # >= 1, no guard needed
        inv = pl.reciprocal(d, approx=True)                        # EUP slot (nearly free)
        inv = inv * (2.0 - d * inv)                                # one Newton step -> f32 accurate
        big = a_i > EPS
        cos_t = jnp.where(big, (a2 - 1.0) * inv, COS2)
        sin_t = jnp.where(big, (a_i + a_i) * inv, SIN2)

        # Harmonics cos(j*theta), sin(j*theta) via angle-addition recurrence (VPU only).
        cj, sj = cos_t, sin_t
        g_i = rw_ref[:, i * r:i * r + 1] * cj - iw_ref[:, i * r:i * r + 1] * sj
        for j in range(1, r):
            cj, sj = cj * cos_t - sj * sin_t, sj * cos_t + cj * sin_t
            g_i = (g_i + rw_ref[:, i * r + j:i * r + j + 1] * cj
                       - iw_ref[:, i * r + j:i * r + j + 1] * sj)
        g_i = g_i + c_ref[:, i:i + 1]

        # Pmul + in-channel reduction, streamed: g (Cout,Cin,N) never materialized.
        out_blk = out_blk + g_i * aux[i:i + 1, :]

    # Second spectral projection: y^T += out_blk @ U[:, blk]^T  (reuse the same U panel).
    y_part = jax.lax.dot_general(
        out_blk.astype(jnp.bfloat16), u_blk,
        dimension_numbers=(((1,), (1,)), ((), ())),
        preferred_element_type=jnp.float32)                        # (Cout, Npad)

    @pl.when(kb == 0)
    def _():
        # NOTE: reference calls output.clamp(min=0) NON-in-place -> it is a no-op; omitted.
        o_ref[...] = jnp.broadcast_to(b_ref[...], o_ref.shape)     # init accumulator with bias
    o_ref[...] = o_ref[...] + y_part


def _round_up(v, m):
    return ((v + m - 1) // m) * m


def cayley_conv_forward(x, U, w_eig, real_weight, imag_weight, h, c, bias, *, tile_n=None):
    """x: (N, Cin); U: (N, N) approx eigenvectors; w_eig: (N,) approx eigenvalues.
    real_weight/imag_weight: (Cout, Cin, r, 1); h: (Cout, Cin); c: (Cout, Cin, 1); bias: (Cout,)."""
    N, Cin = x.shape
    Cout = h.shape[0]
    r = real_weight.shape[2]

    n128 = _round_up(N, 128)
    if tile_n is None:
        # One bf16 U panel is (n_pad x tile_n), double-buffered; keep a single panel
        # around <= ~8 MiB so the whole working set fits v7x's 64 MiB VMEM with headroom.
        t = (8 * 1024 * 1024) // (2 * n128)
        tile_n = min(512, n128, max(128, (t // 128) * 128))
    tile_n = max(128, _round_up(tile_n, 128))
    n_pad = _round_up(n128, tile_n)
    grid_k = n_pad // tile_n

    f32, bf16 = jnp.float32, jnp.bfloat16

    # Pad the node axis; zero-padded U columns/rows and x rows contribute exactly 0.
    U_p = jnp.zeros((n_pad, n_pad), bf16).at[:N, :N].set(U.astype(bf16))
    xt_p = jnp.zeros((Cin, n_pad), bf16).at[:, :N].set(x.T.astype(bf16))
    w_p = jnp.zeros((1, n_pad), f32).at[0, :N].set(w_eig.astype(f32))
    h2 = h.astype(f32)                                             # (Cout, Cin)
    rw2 = real_weight[..., 0].reshape(Cout, Cin * r).astype(f32)   # (Cout, Cin*r)
    iw2 = imag_weight[..., 0].reshape(Cout, Cin * r).astype(f32)
    c2 = c[..., 0].astype(f32)                                     # (Cout, Cin)
    b2 = bias.astype(f32).reshape(Cout, 1)                         # (Cout, 1)

    grid_spec = pltpu.PrefetchScalarGridSpec(
        num_scalar_prefetch=0,
        grid=(grid_k,),
        in_specs=[
            pl.BlockSpec((n_pad, tile_n), lambda kb: (0, kb)),     # U column panel (streamed once)
            pl.BlockSpec((Cin, n_pad), lambda kb: (0, 0)),         # x^T, resident
            pl.BlockSpec((1, tile_n), lambda kb: (0, kb)),         # eigenvalue block
            pl.BlockSpec((Cout, Cin), lambda kb: (0, 0)),          # h
            pl.BlockSpec((Cout, Cin * r), lambda kb: (0, 0)),      # real weights
            pl.BlockSpec((Cout, Cin * r), lambda kb: (0, 0)),      # imag weights
            pl.BlockSpec((Cout, Cin), lambda kb: (0, 0)),          # c
            pl.BlockSpec((Cout, 1), lambda kb: (0, 0)),            # bias
        ],
        out_specs=pl.BlockSpec((Cout, n_pad), lambda kb: (0, 0)),  # y^T accumulator (resident)
    )

    y_t = pl.pallas_call(
        cayley_kernel,
        out_shape=jax.ShapeDtypeStruct((Cout, n_pad), f32),
        grid_spec=grid_spec,
        compiler_params=pltpu.CompilerParams(
            # single axis is a reduction into the resident output -> arbitrary
            # TODO(synk): add an independent (parallel) output-node axis for v7x megacore.
            dimension_semantics=("arbitrary",),
            vmem_limit_bytes=48 * 1024 * 1024),
    )(U_p, xt_p, w_p, h2, rw2, iw2, c2, b2)

    return y_t[:, :N].T                                            # (N, Cout)


# ---------------------------------------------------------------------------
# Plain-JAX reference mirroring the PyTorch forward (for a sanity check)
# ---------------------------------------------------------------------------
def reference_forward(x, U, w_eig, real_weight, imag_weight, h, c, bias, r):
    Ut = U.T
    aux = Ut @ x                                                      # (N, Cin)
    A = h[:, :, None] * w_eig[None, None, :]                          # (Cout, Cin, N)
    aux2 = jnp.where(A > EPS, 2.0 * jnp.arctan(1.0 / A), 2.0)
    aux2 = aux2[:, :, :, None] * jnp.arange(1, r + 1, dtype=jnp.float32)  # (Cout, Cin, N, r)
    aux_cos = real_weight * jnp.cos(aux2).transpose(0, 1, 3, 2)       # (Cout, Cin, r, N)
    aux_sin = imag_weight * jnp.sin(aux2).transpose(0, 1, 3, 2)
    s = jnp.sum(aux_cos - aux_sin, axis=2) + c                        # (Cout, Cin, N)
    s = s.transpose(0, 2, 1)                                          # (Cout, N, Cin)
    out = jnp.sum(s * aux[None, :, :], axis=2).T                      # (N, Cout)
    output = U @ out
    # clamp(min=0) in the reference is not in-place -> no-op
    return output + bias


# ---------------------------------------------------------------------------
if __name__ == "__main__":
    N, Cin, Cout, r = 256, 4, 8, 3

    # deterministic ring graph (undirected: both directions), unit edge weights
    src = np.arange(N)
    dst = (src + 1) % N
    edge_index = np.stack([np.concatenate([src, dst]), np.concatenate([dst, src])])

    L = sym_laplacian_dense(edge_index, N)                            # 'sym' normalization
    w_np, U_np = jacobi(L, iterations=10)                             # approx eigendecomposition
    w_eig = jnp.asarray(np.array(w_np), dtype=jnp.float32)
    U = jnp.asarray(U_np, dtype=jnp.float32)

    # deterministic parameter init (shapes from CayleyConv.__init__ / reset_parameters)
    key = jax.random.PRNGKey(0)
    kx, kr, ki, kh, kc = jax.random.split(key, 5)
    stdv = 1.0 / math.sqrt(Cin)
    x = jax.random.normal(kx, (N, Cin), dtype=jnp.float32)
    real_weight = jax.random.uniform(kr, (Cout, Cin, r, 1), minval=-stdv, maxval=stdv, dtype=jnp.float32)
    imag_weight = jax.random.uniform(ki, (Cout, Cin, r, 1), minval=-stdv, maxval=stdv, dtype=jnp.float32)
    h = jax.random.uniform(kh, (Cout, Cin), minval=-stdv, maxval=stdv, dtype=jnp.float32)
    c = jax.random.uniform(kc, (Cout, Cin, 1), minval=-stdv, maxval=stdv, dtype=jnp.float32)
    bias = jnp.zeros((Cout,), dtype=jnp.float32)                      # reset_parameters zeroes bias

    # tile_n=128 with N=256 -> a 2-step grid: exercises the streamed-U accumulation path.
    out = cayley_conv_forward(x, U, w_eig, real_weight, imag_weight, h, c, bias, tile_n=128)
    out = jax.block_until_ready(out)

    ref = jax.block_until_ready(
        reference_forward(x, U, w_eig, real_weight, imag_weight, h, c, bias, r))

    assert out.shape == (N, Cout), out.shape
    assert np.all(np.isfinite(np.asarray(out)))
    assert np.allclose(np.asarray(out), np.asarray(ref), rtol=5e-2, atol=5e-2)
    print("KERNEL_OK")
</pallas_src>

<mosaic_0001>
module attributes {stable_mosaic.version = 11 : i64} {
  func.func @cayley_kernel(%arg0: i32, %arg1: memref<256x128xbf16, #tpu.memory_space<vmem>>, %arg2: memref<4x256xbf16, #tpu.memory_space<vmem>>, %arg3: memref<1x128xf32, #tpu.memory_space<vmem>>, %arg4: memref<8x4xf32, #tpu.memory_space<vmem>>, %arg5: memref<8x12xf32, #tpu.memory_space<vmem>>, %arg6: memref<8x12xf32, #tpu.memory_space<vmem>>, %arg7: memref<8x4xf32, #tpu.memory_space<vmem>>, %arg8: memref<8x1xf32, #tpu.memory_space<vmem>>, %arg9: memref<8x256xf32, #tpu.memory_space<vmem>>) attributes {dimension_semantics = [#tpu.dimension_semantics<arbitrary>], iteration_bounds = array<i64: 2>, scalar_prefetch = 0 : i64, scratch_operands = 0 : i64, tpu.core_type = #tpu.core_type<tc>, window_params = [{transform_indices = @transform_0, window_bounds = array<i64: 256, 128>}, {pipeline_mode = #tpu.pipeline_mode<synchronous>, transform_indices = @transform_1, window_bounds = array<i64: 4, 256>}, {transform_indices = @transform_2, window_bounds = array<i64: 1, 128>}, {pipeline_mode = #tpu.pipeline_mode<synchronous>, transform_indices = @transform_3, window_bounds = array<i64: 8, 4>}, {pipeline_mode = #tpu.pipeline_mode<synchronous>, transform_indices = @transform_4, window_bounds = array<i64: 8, 12>}, {pipeline_mode = #tpu.pipeline_mode<synchronous>, transform_indices = @transform_5, window_bounds = array<i64: 8, 12>}, {pipeline_mode = #tpu.pipeline_mode<synchronous>, transform_indices = @transform_6, window_bounds = array<i64: 8, 4>}, {pipeline_mode = #tpu.pipeline_mode<synchronous>, transform_indices = @transform_7, window_bounds = array<i64: 8, 1>}, {pipeline_mode = #tpu.pipeline_mode<synchronous>, transform_indices = @transform_8, window_bounds = array<i64: 8, 256>}]} {
    %c0 = arith.constant 0 : index
    %c0_0 = arith.constant 0 : index
    %0 = vector.load %arg1[%c0, %c0_0] : memref<256x128xbf16, #tpu.memory_space<vmem>>, vector<256x128xbf16>
    %c0_1 = arith.constant 0 : index
    %c0_2 = arith.constant 0 : index
    %1 = vector.load %arg2[%c0_1, %c0_2] : memref<4x256xbf16, #tpu.memory_space<vmem>>, vector<4x256xbf16>
    %cst = arith.constant dense<0.000000e+00> : vector<4x128xf32>
    %2 = tpu.matmul %1, %0, %cst {dimension_numbers = #tpu.dot_dimension_numbers<[1], [0], [0], [1], [0, 0, 1, 1], [], []>} : vector<4x256xbf16>, vector<256x128xbf16>, vector<4x128xf32> -> vector<4x128xf32>
    %c0_3 = arith.constant 0 : index
    %c0_4 = arith.constant 0 : index
    %3 = vector.load %arg3[%c0_3, %c0_4] : memref<1x128xf32, #tpu.memory_space<vmem>>, vector<1x128xf32>
    %4 = vector.shape_cast %3 : vector<1x128xf32> to vector<1x128xf32>
    %5 = vector.broadcast %4 : vector<1x128xf32> to vector<8x128xf32>
    %cst_5 = arith.constant 0.000000e+00 : f32
    %6 = vector.broadcast %cst_5 : f32 to vector<8x128xf32>
    %c0_6 = arith.constant 0 : index
    %c0_7 = arith.constant 0 : index
    %7 = vector.load %arg4[%c0_6, %c0_7] : memref<8x4xf32, #tpu.memory_space<vmem>>, vector<8x1xf32>
    %8 = vector.broadcast %7 : vector<8x1xf32> to vector<8x128xf32>
    %9 = arith.mulf %8, %5 : vector<8x128xf32>
    %10 = arith.mulf %9, %9 : vector<8x128xf32>
    %cst_8 = arith.constant 1.000000e+00 : f32
    %11 = vector.broadcast %cst_8 : f32 to vector<8x128xf32>
    %12 = arith.addf %10, %11 : vector<8x128xf32>
    %13 = tpu.reciprocal %12 {approx = true} : vector<8x128xf32> -> vector<8x128xf32>
    %14 = arith.mulf %12, %13 : vector<8x128xf32>
    %cst_9 = arith.constant 2.000000e+00 : f32
    %15 = vector.broadcast %cst_9 : f32 to vector<8x128xf32>
    %16 = arith.subf %15, %14 : vector<8x128xf32>
    %17 = arith.mulf %13, %16 : vector<8x128xf32>
    %cst_10 = arith.constant 9.99999974E-6 : f32
    %18 = vector.broadcast %cst_10 : f32 to vector<8x128xf32>
    %19 = arith.cmpf ogt, %9, %18 : vector<8x128xf32>
    %cst_11 = arith.constant 1.000000e+00 : f32
    %20 = vector.broadcast %cst_11 : f32 to vector<8x128xf32>
    %21 = arith.subf %10, %20 : vector<8x128xf32>
    %22 = arith.mulf %21, %17 : vector<8x128xf32>
    %cst_12 = arith.constant -0.416146845 : f32
    %23 = vector.broadcast %cst_12 : f32 to vector<8x128xf32>
    %24 = arith.select %19, %22, %23 : vector<8x128xi1>, vector<8x128xf32>
    %25 = arith.addf %9, %9 : vector<8x128xf32>
    %26 = arith.mulf %25, %17 : vector<8x128xf32>
    %cst_13 = arith.constant 0.909297406 : f32
    %27 = vector.broadcast %cst_13 : f32 to vector<8x128xf32>
    %28 = arith.select %19, %26, %27 : vector<8x128xi1>, vector<8x128xf32>
    %c0_14 = arith.constant 0 : index
    %c0_15 = arith.constant 0 : index
    %29 = vector.load %arg5[%c0_14, %c0_15] : memref<8x12xf32, #tpu.memory_space<vmem>>, vector<8x1xf32>
    %30 = vector.broadcast %29 : vector<8x1xf32> to vector<8x128xf32>
    %31 = arith.mulf %30, %24 : vector<8x128xf32>
    %c0_16 = arith.constant 0 : index
    %c0_17 = arith.constant 0 : index
    %32 = vector.load %arg6[%c0_16, %c0_17] : memref<8x12xf32, #tpu.memory_space<vmem>>, vector<8x1xf32>
    %33 = vector.broadcast %32 : vector<8x1xf32> to vector<8x128xf32>
    %34 = arith.mulf %33, %28 : vector<8x128xf32>
    %35 = arith.subf %31, %34 : vector<8x128xf32>
    %36 = arith.mulf %24, %24 : vector<8x128xf32>
    %37 = arith.mulf %28, %28 : vector<8x128xf32>
    %38 = arith.subf %36, %37 : vector<8x128xf32>
    %39 = arith.mulf %28, %24 : vector<8x128xf32>
    %40 = arith.mulf %24, %28 : vector<8x128xf32>
    %41 = arith.addf %39, %40 : vector<8x128xf32>
    %c0_18 = arith.constant 0 : index
    %c1 = arith.constant 1 : index
    %42 = vector.load %arg5[%c0_18, %c1] : memref<8x12xf32, #tpu.memory_space<vmem>>, vector<8x1xf32>
    %43 = vector.broadcast %42 : vector<8x1xf32> to vector<8x128xf32>
    %44 = arith.mulf %43, %38 : vector<8x128xf32>
    %45 = arith.addf %35, %44 : vector<8x128xf32>
    %c0_19 = arith.constant 0 : index
    %c1_20 = arith.constant 1 : index
    %46 = vector.load %arg6[%c0_19, %c1_20] : memref<8x12xf32, #tpu.memory_space<vmem>>, vector<8x1xf32>
    %47 = vector.broadcast %46 : vector<8x1xf32> to vector<8x128xf32>
    %48 = arith.mulf %47, %41 : vector<8x128xf32>
    %49 = arith.subf %45, %48 : vector<8x128xf32>
    %50 = arith.mulf %38, %24 : vector<8x128xf32>
    %51 = arith.mulf %41, %28 : vector<8x128xf32>
    %52 = arith.subf %50, %51 : vector<8x128xf32>
    %53 = arith.mulf %41, %24 : vector<8x128xf32>
    %54 = arith.mulf %38, %28 : vector<8x128xf32>
    %55 = arith.addf %53, %54 : vector<8x128xf32>
    %c0_21 = arith.constant 0 : index
    %c2 = arith.constant 2 : index
    %56 = vector.load %arg5[%c0_21, %c2] : memref<8x12xf32, #tpu.memory_space<vmem>>, vector<8x1xf32>
    %57 = vector.broadcast %56 : vector<8x1xf32> to vector<8x128xf32>
    %58 = arith.mulf %57, %52 : vector<8x128xf32>
    %59 = arith.addf %49, %58 : vector<8x128xf32>
    %c0_22 = arith.constant 0 : index
    %c2_23 = arith.constant 2 : index
    %60 = vector.load %arg6[%c0_22, %c2_23] : memref<8x12xf32, #tpu.memory_space<vmem>>, vector<8x1xf32>
    %61 = vector.broadcast %60 : vector<8x1xf32> to vector<8x128xf32>
    %62 = arith.mulf %61, %55 : vector<8x128xf32>
    %63 = arith.subf %59, %62 : vector<8x128xf32>
    %c0_24 = arith.constant 0 : index
    %c0_25 = arith.constant 0 : index
    %64 = vector.load %arg7[%c0_24, %c0_25] : memref<8x4xf32, #tpu.memory_space<vmem>>, vector<8x1xf32>
    %65 = vector.broadcast %64 : vector<8x1xf32> to vector<8x128xf32>
    %66 = arith.addf %63, %65 : vector<8x128xf32>
    %67 = vector.extract_strided_slice %2 {offsets = [0, 0], sizes = [1, 128], strides = [1, 1]} : vector<4x128xf32> to vector<1x128xf32>
    %68 = vector.broadcast %67 : vector<1x128xf32> to vector<8x128xf32>
    %69 = arith.mulf %66, %68 : vector<8x128xf32>
    %70 = arith.addf %6, %69 : vector<8x128xf32>
    %c0_26 = arith.constant 0 : index
    %c1_27 = arith.constant 1 : index
    %71 = vector.load %arg4[%c0_26, %c1_27] : memref<8x4xf32, #tpu.memory_space<vmem>>, vector<8x1xf32>
    %72 = vector.broadcast %71 : vector<8x1xf32> to vector<8x128xf32>
    %73 = arith.mulf %72, %5 : vector<8x128xf32>
    %74 = arith.mulf %73, %73 : vector<8x128xf32>
    %cst_28 = arith.constant 1.000000e+00 : f32
    %75 = vector.broadcast %cst_28 : f32 to vector<8x128xf32>
    %76 = arith.addf %74, %75 : vector<8x128xf32>
    %77 = tpu.reciprocal %76 {approx = true} : vector<8x128xf32> -> vector<8x128xf32>
    %78 = arith.mulf %76, %77 : vector<8x128xf32>
    %cst_29 = arith.constant 2.000000e+00 : f32
    %79 = vector.broadcast %cst_29 : f32 to vector<8x128xf32>
    %80 = arith.subf %79, %78 : vector<8x128xf32>
    %81 = arith.mulf %77, %80 : vector<8x128xf32>
    %cst_30 = arith.constant 9.99999974E-6 : f32
    %82 = vector.broadcast %cst_30 : f32 to vector<8x128xf32>
    %83 = arith.cmpf ogt, %73, %82 : vector<8x128xf32>
    %cst_31 = arith.constant 1.000000e+00 : f32
    %84 = vector.broadcast %cst_31 : f32 to vector<8x128xf32>
    %85 = arith.subf %74, %84 : vector<8x128xf32>
    %86 = arith.mulf %85, %81 : vector<8x128xf32>
    %cst_32 = arith.constant -0.416146845 : f32
    %87 = vector.broadcast %cst_32 : f32 to vector<8x128xf32>
    %88 = arith.select %83, %86, %87 : vector<8x128xi1>, vector<8x128xf32>
    %89 = arith.addf %73, %73 : vector<8x128xf32>
    %90 = arith.mulf %89, %81 : vector<8x128xf32>
    %cst_33 = arith.constant 0.909297406 : f32
    %91 = vector.broadcast %cst_33 : f32 to vector<8x128xf32>
    %92 = arith.select %83, %90, %91 : vector<8x128xi1>, vector<8x128xf32>
    %c0_34 = arith.constant 0 : index
    %c3 = arith.constant 3 : index
    %93 = vector.load %arg5[%c0_34, %c3] : memref<8x12xf32, #tpu.memory_space<vmem>>, vector<8x1xf32>
    %94 = vector.broadcast %93 : vector<8x1xf32> to vector<8x128xf32>
    %95 = arith.mulf %94, %88 : vector<8x128xf32>
    %c0_35 = arith.constant 0 : index
    %c3_36 = arith.constant 3 : index
    %96 = vector.load %arg6[%c0_35, %c3_36] : memref<8x12xf32, #tpu.memory_space<vmem>>, vector<8x1xf32>
    %97 = vector.broadcast %96 : vector<8x1xf32> to vector<8x128xf32>
    %98 = arith.mulf %97, %92 : vector<8x128xf32>
    %99 = arith.subf %95, %98 : vector<8x128xf32>
    %100 = arith.mulf %88, %88 : vector<8x128xf32>
    %101 = arith.mulf %92, %92 : vector<8x128xf32>
    %102 = arith.subf %100, %101 : vector<8x128xf32>
    %103 = arith.mulf %92, %88 : vector<8x128xf32>
    %104 = arith.mulf %88, %92 : vector<8x128xf32>
    %105 = arith.addf %103, %104 : vector<8x128xf32>
    %c0_37 = arith.constant 0 : index
    %c4 = arith.constant 4 : index
    %106 = vector.load %arg5[%c0_37, %c4] : memref<8x12xf32, #tpu.memory_space<vmem>>, vector<8x1xf32>
    %107 = vector.broadcast %106 : vector<8x1xf32> to vector<8x128xf32>
    %108 = arith.mulf %107, %102 : vector<8x128xf32>
    %109 = arith.addf %99, %108 : vector<8x128xf32>
    %c0_38 = arith.constant 0 : index
    %c4_39 = arith.constant 4 : index
    %110 = vector.load %arg6[%c0_38, %c4_39] : memref<8x12xf32, #tpu.memory_space<vmem>>, vector<8x1xf32>
    %111 = vector.broadcast %110 : vector<8x1xf32> to vector<8x128xf32>
    %112 = arith.mulf %111, %105 : vector<8x128xf32>
    %113 = arith.subf %109, %112 : vector<8x128xf32>
    %114 = arith.mulf %102, %88 : vector<8x128xf32>
    %115 = arith.mulf %105, %92 : vector<8x128xf32>
    %116 = arith.subf %114, %115 : vector<8x128xf32>
    %117 = arith.mulf %105, %88 : vector<8x128xf32>
    %118 = arith.mulf %102, %92 : vector<8x128xf32>
    %119 = arith.addf %117, %118 : vector<8x128xf32>
    %c0_40 = arith.constant 0 : index
    %c5 = arith.constant 5 : index
    %120 = vector.load %arg5[%c0_40, %c5] : memref<8x12xf32, #tpu.memory_space<vmem>>, vector<8x1xf32>
    %121 = vector.broadcast %120 : vector<8x1xf32> to vector<8x128xf32>
    %122 = arith.mulf %121, %116 : vector<8x128xf32>
    %123 = arith.addf %113, %122 : vector<8x128xf32>
    %c0_41 = arith.constant 0 : index
    %c5_42 = arith.constant 5 : index
    %124 = vector.load %arg6[%c0_41, %c5_42] : memref<8x12xf32, #tpu.memory_space<vmem>>, vector<8x1xf32>
    %125 = vector.broadcast %124 : vector<8x1xf32> to vector<8x128xf32>
    %126 = arith.mulf %125, %119 : vector<8x128xf32>
    %127 = arith.subf %123, %126 : vector<8x128xf32>
    %c0_43 = arith.constant 0 : index
    %c1_44 = arith.constant 1 : index
    %128 = vector.load %arg7[%c0_43, %c1_44] : memref<8x4xf32, #tpu.memory_space<vmem>>, vector<8x1xf32>
    %129 = vector.broadcast %128 : vector<8x1xf32> to vector<8x128xf32>
    %130 = arith.addf %127, %129 : vector<8x128xf32>
    %131 = vector.extract_strided_slice %2 {offsets = [1, 0], sizes = [1, 128], strides = [1, 1]} : vector<4x128xf32> to vector<1x128xf32>
    %132 = vector.broadcast %131 : vector<1x128xf32> to vector<8x128xf32>
    %133 = arith.mulf %130, %132 : vector<8x128xf32>
    %134 = arith.addf %70, %133 : vector<8x128xf32>
    %c0_45 = arith.constant 0 : index
    %c2_46 = arith.constant 2 : index
    %135 = vector.load %arg4[%c0_45, %c2_46] : memref<8x4xf32, #tpu.memory_space<vmem>>, vector<8x1xf32>
    %136 = vector.broadcast %135 : vector<8x1xf32> to vector<8x128xf32>
    %137 = arith.mulf %136, %5 : vector<8x128xf32>
    %138 = arith.mulf %137, %137 : vector<8x128xf32>
    %cst_47 = arith.constant 1.000000e+00 : f32
    %139 = vector.broadcast %cst_47 : f32 to vector<8x128xf32>
    %140 = arith.addf %138, %139 : vector<8x128xf32>
    %141 = tpu.reciprocal %140 {approx = true} : vector<8x128xf32> -> vector<8x128xf32>
    %142 = arith.mulf %140, %141 : vector<8x128xf32>
    %cst_48 = arith.constant 2.000000e+00 : f32
    %143 = vector.broadcast %cst_48 : f32 to vector<8x128xf32>
    %144 = arith.subf %143, %142 : vector<8x128xf32>
    %145 = arith.mulf %141, %144 : vector<8x128xf32>
    %cst_49 = arith.constant 9.99999974E-6 : f32
    %146 = vector.broadcast %cst_49 : f32 to vector<8x128xf32>
    %147 = arith.cmpf ogt, %137, %146 : vector<8x128xf32>
    %cst_50 = arith.constant 1.000000e+00 : f32
    %148 = vector.broadcast %cst_50 : f32 to vector<8x128xf32>
    %149 = arith.subf %138, %148 : vector<8x128xf32>
    %150 = arith.mulf %149, %145 : vector<8x128xf32>
    %cst_51 = arith.constant -0.416146845 : f32
    %151 = vector.broadcast %cst_51 : f32 to vector<8x128xf32>
    %152 = arith.select %147, %150, %151 : vector<8x128xi1>, vector<8x128xf32>
    %153 = arith.addf %137, %137 : vector<8x128xf32>
    %154 = arith.mulf %153, %145 : vector<8x128xf32>
    %cst_52 = arith.constant 0.909297406 : f32
    %155 = vector.broadcast %cst_52 : f32 to vector<8x128xf32>
    %156 = arith.select %147, %154, %155 : vector<8x128xi1>, vector<8x128xf32>
    %c0_53 = arith.constant 0 : index
    %c6 = arith.constant 6 : index
    %157 = vector.load %arg5[%c0_53, %c6] : memref<8x12xf32, #tpu.memory_space<vmem>>, vector<8x1xf32>
    %158 = vector.broadcast %157 : vector<8x1xf32> to vector<8x128xf32>
    %159 = arith.mulf %158, %152 : vector<8x128xf32>
    %c0_54 = arith.constant 0 : index
    %c6_55 = arith.constant 6 : index
    %160 = vector.load %arg6[%c0_54, %c6_55] : memref<8x12xf32, #tpu.memory_space<vmem>>, vector<8x1xf32>
    %161 = vector.broadcast %160 : vector<8x1xf32> to vector<8x128xf32>
    %162 = arith.mulf %161, %156 : vector<8x128xf32>
    %163 = arith.subf %159, %162 : vector<8x128xf32>
    %164 = arith.mulf %152, %152 : vector<8x128xf32>
    %165 = arith.mulf %156, %156 : vector<8x128xf32>
    %166 = arith.subf %164, %165 : vector<8x128xf32>
    %167 = arith.mulf %156, %152 : vector<8x128xf32>
    %168 = arith.mulf %152, %156 : vector<8x128xf32>
    %169 = arith.addf %167, %168 : vector<8x128xf32>
    %c0_56 = arith.constant 0 : index
    %c7 = arith.constant 7 : index
    %170 = vector.load %arg5[%c0_56, %c7] : memref<8x12xf32, #tpu.memory_space<vmem>>, vector<8x1xf32>
    %171 = vector.broadcast %170 : vector<8x1xf32> to vector<8x128xf32>
    %172 = arith.mulf %171, %166 : vector<8x128xf32>
    %173 = arith.addf %163, %172 : vector<8x128xf32>
    %c0_57 = arith.constant 0 : index
    %c7_58 = arith.constant 7 : index
    %174 = vector.load %arg6[%c0_57, %c7_58] : memref<8x12xf32, #tpu.memory_space<vmem>>, vector<8x1xf32>
    %175 = vector.broadcast %174 : vector<8x1xf32> to vector<8x128xf32>
    %176 = arith.mulf %175, %169 : vector<8x128xf32>
    %177 = arith.subf %173, %176 : vector<8x128xf32>
    %178 = arith.mulf %166, %152 : vector<8x128xf32>
    %179 = arith.mulf %169, %156 : vector<8x128xf32>
    %180 = arith.subf %178, %179 : vector<8x128xf32>
    %181 = arith.mulf %169, %152 : vector<8x128xf32>
    %182 = arith.mulf %166, %156 : vector<8x128xf32>
    %183 = arith.addf %181, %182 : vector<8x128xf32>
    %c0_59 = arith.constant 0 : index
    %c8 = arith.constant 8 : index
    %184 = vector.load %arg5[%c0_59, %c8] : memref<8x12xf32, #tpu.memory_space<vmem>>, vector<8x1xf32>
    %185 = vector.broadcast %184 : vector<8x1xf32> to vector<8x128xf32>
    %186 = arith.mulf %185, %180 : vector<8x128xf32>
    %187 = arith.addf %177, %186 : vector<8x128xf32>
    %c0_60 = arith.constant 0 : index
    %c8_61 = arith.constant 8 : index
    %188 = vector.load %arg6[%c0_60, %c8_61] : memref<8x12xf32, #tpu.memory_space<vmem>>, vector<8x1xf32>
    %189 = vector.broadcast %188 : vector<8x1xf32> to vector<8x128xf32>
    %190 = arith.mulf %189, %183 : vector<8x128xf32>
    %191 = arith.subf %187, %190 : vector<8x128xf32>
    %c0_62 = arith.constant 0 : index
    %c2_63 = arith.constant 2 : index
    %192 = vector.load %arg7[%c0_62, %c2_63] : memref<8x4xf32, #tpu.memory_space<vmem>>, vector<8x1xf32>
    %193 = vector.broadcast %192 : vector<8x1xf32> to vector<8x128xf32>
    %194 = arith.addf %191, %193 : vector<8x128xf32>
    %195 = vector.extract_strided_slice %2 {offsets = [2, 0], sizes = [1, 128], strides = [1, 1]} : vector<4x128xf32> to vector<1x128xf32>
    %196 = vector.broadcast %195 : vector<1x128xf32> to vector<8x128xf32>
    %197 = arith.mulf %194, %196 : vector<8x128xf32>
    %198 = arith.addf %134, %197 : vector<8x128xf32>
    %c0_64 = arith.constant 0 : index
    %c3_65 = arith.constant 3 : index
    %199 = vector.load %arg4[%c0_64, %c3_65] : memref<8x4xf32, #tpu.memory_space<vmem>>, vector<8x1xf32>
    %200 = vector.broadcast %199 : vector<8x1xf32> to vector<8x128xf32>
    %201 = arith.mulf %200, %5 : vector<8x128xf32>
    %202 = arith.mulf %201, %201 : vector<8x128xf32>
    %cst_66 = arith.constant 1.000000e+00 : f32
    %203 = vector.broadcast %cst_66 : f32 to vector<8x128xf32>
    %204 = arith.addf %202, %203 : vector<8x128xf32>
    %205 = tpu.reciprocal %204 {approx = true} : vector<8x128xf32> -> vector<8x128xf32>
    %206 = arith.mulf %204, %205 : vector<8x128xf32>
    %cst_67 = arith.constant 2.000000e+00 : f32
    %207 = vector.broadcast %cst_67 : f32 to vector<8x128xf32>
    %208 = arith.subf %207, %206 : vector<8x128xf32>
    %209 = arith.mulf %205, %208 : vector<8x128xf32>
    %cst_68 = arith.constant 9.99999974E-6 : f32
    %210 = vector.broadcast %cst_68 : f32 to vector<8x128xf32>
    %211 = arith.cmpf ogt, %201, %210 : vector<8x128xf32>
    %cst_69 = arith.constant 1.000000e+00 : f32
    %212 = vector.broadcast %cst_69 : f32 to vector<8x128xf32>
    %213 = arith.subf %202, %212 : vector<8x128xf32>
    %214 = arith.mulf %213, %209 : vector<8x128xf32>
    %cst_70 = arith.constant -0.416146845 : f32
    %215 = vector.broadcast %cst_70 : f32 to vector<8x128xf32>
    %216 = arith.select %211, %214, %215 : vector<8x128xi1>, vector<8x128xf32>
    %217 = arith.addf %201, %201 : vector<8x128xf32>
    %218 = arith.mulf %217, %209 : vector<8x128xf32>
    %cst_71 = arith.constant 0.909297406 : f32
    %219 = vector.broadcast %cst_71 : f32 to vector<8x128xf32>
    %220 = arith.select %211, %218, %219 : vector<8x128xi1>, vector<8x128xf32>
    %c0_72 = arith.constant 0 : index
    %c9 = arith.constant 9 : index
    %221 = vector.load %arg5[%c0_72, %c9] : memref<8x12xf32, #tpu.memory_space<vmem>>, vector<8x1xf32>
    %222 = vector.broadcast %221 : vector<8x1xf32> to vector<8x128xf32>
    %223 = arith.mulf %222, %216 : vector<8x128xf32>
    %c0_73 = arith.constant 0 : index
    %c9_74 = arith.constant 9 : index
    %224 = vector.load %arg6[%c0_73, %c9_74] : memref<8x12xf32, #tpu.memory_space<vmem>>, vector<8x1xf32>
    %225 = vector.broadcast %224 : vector<8x1xf32> to vector<8x128xf32>
    %226 = arith.mulf %225, %220 : vector<8x128xf32>
    %227 = arith.subf %223, %226 : vector<8x128xf32>
    %228 = arith.mulf %216, %216 : vector<8x128xf32>
    %229 = arith.mulf %220, %220 : vector<8x128xf32>
    %230 = arith.subf %228, %229 : vector<8x128xf32>
    %231 = arith.mulf %220, %216 : vector<8x128xf32>
    %232 = arith.mulf %216, %220 : vector<8x128xf32>
    %233 = arith.addf %231, %232 : vector<8x128xf32>
    %c0_75 = arith.constant 0 : index
    %c10 = arith.constant 10 : index
    %234 = vector.load %arg5[%c0_75, %c10] : memref<8x12xf32, #tpu.memory_space<vmem>>, vector<8x1xf32>
    %235 = vector.broadcast %234 : vector<8x1xf32> to vector<8x128xf32>
    %236 = arith.mulf %235, %230 : vector<8x128xf32>
    %237 = arith.addf %227, %236 : vector<8x128xf32>
    %c0_76 = arith.constant 0 : index
    %c10_77 = arith.constant 10 : index
    %238 = vector.load %arg6[%c0_76, %c10_77] : memref<8x12xf32, #tpu.memory_space<vmem>>, vector<8x1xf32>
    %239 = vector.broadcast %238 : vector<8x1xf32> to vector<8x128xf32>
    %240 = arith.mulf %239, %233 : vector<8x128xf32>
    %241 = arith.subf %237, %240 : vector<8x128xf32>
    %242 = arith.mulf %230, %216 : vector<8x128xf32>
    %243 = arith.mulf %233, %220 : vector<8x128xf32>
    %244 = arith.subf %242, %243 : vector<8x128xf32>
    %245 = arith.mulf %233, %216 : vector<8x128xf32>
    %246 = arith.mulf %230, %220 : vector<8x128xf32>
    %247 = arith.addf %245, %246 : vector<8x128xf32>
    %c0_78 = arith.constant 0 : index
    %c11 = arith.constant 11 : index
    %248 = vector.load %arg5[%c0_78, %c11] : memref<8x12xf32, #tpu.memory_space<vmem>>, vector<8x1xf32>
    %249 = vector.broadcast %248 : vector<8x1xf32> to vector<8x128xf32>
    %250 = arith.mulf %249, %244 : vector<8x128xf32>
    %251 = arith.addf %241, %250 : vector<8x128xf32>
    %c0_79 = arith.constant 0 : index
    %c11_80 = arith.constant 11 : index
    %252 = vector.load %arg6[%c0_79, %c11_80] : memref<8x12xf32, #tpu.memory_space<vmem>>, vector<8x1xf32>
    %253 = vector.broadcast %252 : vector<8x1xf32> to vector<8x128xf32>
    %254 = arith.mulf %253, %247 : vector<8x128xf32>
    %255 = arith.subf %251, %254 : vector<8x128xf32>
    %c0_81 = arith.constant 0 : index
    %c3_82 = arith.constant 3 : index
    %256 = vector.load %arg7[%c0_81, %c3_82] : memref<8x4xf32, #tpu.memory_space<vmem>>, vector<8x1xf32>
    %257 = vector.broadcast %256 : vector<8x1xf32> to vector<8x128xf32>
    %258 = arith.addf %255, %257 : vector<8x128xf32>
    %259 = vector.extract_strided_slice %2 {offsets = [3, 0], sizes = [1, 128], strides = [1, 1]} : vector<4x128xf32> to vector<1x128xf32>
    %260 = vector.broadcast %259 : vector<1x128xf32> to vector<8x128xf32>
    %261 = arith.mulf %258, %260 : vector<8x128xf32>
    %262 = arith.addf %198, %261 : vector<8x128xf32>
    %263 = arith.truncf %262 : vector<8x128xf32> to vector<8x128xbf16>
    %cst_83 = arith.constant dense<0.000000e+00> : vector<8x256xf32>
    %264 = tpu.matmul %263, %0, %cst_83 {dimension_numbers = #tpu.dot_dimension_numbers<[1], [1], [0], [0], [0, 0, 1, 0], [], []>} : vector<8x128xbf16>, vector<256x128xbf16>, vector<8x256xf32> -> vector<8x256xf32>
    %c0_i32 = arith.constant 0 : i32
    %265 = arith.cmpi eq, %arg0, %c0_i32 : i32
    %266 = arith.extui %265 : i1 to i32
    %c0_i32_84 = arith.constant 0 : i32
    %267 = arith.cmpi ne, %266, %c0_i32_84 : i32
    scf.if %267 {
      %c0_89 = arith.constant 0 : index
      %c0_90 = arith.constant 0 : index
      %271 = vector.load %arg8[%c0_89, %c0_90] : memref<8x1xf32, #tpu.memory_space<vmem>>, vector<8x1xf32>
      %272 = vector.shape_cast %271 : vector<8x1xf32> to vector<8x1xf32>
      %273 = vector.broadcast %272 : vector<8x1xf32> to vector<8x256xf32>
      %c0_91 = arith.constant 0 : index
      %c0_92 = arith.constant 0 : index
      %274 = vector.load %arg9[%c0_91, %c0_92] : memref<8x256xf32, #tpu.memory_space<vmem>>, vector<8x256xf32>
      tpu.vector_store %arg9[%c0_91, %c0_92], %273 {strides = array<i32>} : memref<8x256xf32, #tpu.memory_space<vmem>>, vector<8x256xf32>,
    } else {
    }
    %c0_85 = arith.constant 0 : index
    %c0_86 = arith.constant 0 : index
    %268 = vector.load %arg9[%c0_85, %c0_86] : memref<8x256xf32, #tpu.memory_space<vmem>>, vector<8x256xf32>
    %269 = arith.addf %268, %264 : vector<8x256xf32>
    %c0_87 = arith.constant 0 : index
    %c0_88 = arith.constant 0 : index
    %270 = vector.load %arg9[%c0_87, %c0_88] : memref<8x256xf32, #tpu.memory_space<vmem>>, vector<8x256xf32>
    tpu.vector_store %arg9[%c0_87, %c0_88], %269 {strides = array<i32>} : memref<8x256xf32, #tpu.memory_space<vmem>>, vector<8x256xf32>,
    return
  }
  func.func @transform_0(%arg0: i32) -> (i32, i32) {
    %c0_i32 = arith.constant 0 : i32
    %c0_i32_0 = arith.constant 0 : i32
    return %c0_i32, %arg0 : i32, i32
  }
  func.func @transform_1(%arg0: i32) -> (i32, i32) {
    %c0_i32 = arith.constant 0 : i32
    %c0_i32_0 = arith.constant 0 : i32
    %c0_i32_1 = arith.constant 0 : i32
    return %c0_i32, %c0_i32_0 : i32, i32
  }
  func.func @transform_2(%arg0: i32) -> (i32, i32) {
    %c0_i32 = arith.constant 0 : i32
    %c0_i32_0 = arith.constant 0 : i32
    return %c0_i32, %arg0 : i32, i32
  }
  func.func @transform_3(%arg0: i32) -> (i32, i32) {
    %c0_i32 = arith.constant 0 : i32
    %c0_i32_0 = arith.constant 0 : i32
    %c0_i32_1 = arith.constant 0 : i32
    return %c0_i32, %c0_i32_0 : i32, i32
  }
  func.func @transform_4(%arg0: i32) -> (i32, i32) {
    %c0_i32 = arith.constant 0 : i32
    %c0_i32_0 = arith.constant 0 : i32
    %c0_i32_1 = arith.constant 0 : i32
    return %c0_i32, %c0_i32_0 : i32, i32
  }
  func.func @transform_5(%arg0: i32) -> (i32, i32) {
    %c0_i32 = arith.constant 0 : i32
    %c0_i32_0 = arith.constant 0 : i32
    %c0_i32_1 = arith.constant 0 : i32
    return %c0_i32, %c0_i32_0 : i32, i32
  }
  func.func @transform_6(%arg0: i32) -> (i32, i32) {
    %c0_i32 = arith.constant 0 : i32
    %c0_i32_0 = arith.constant 0 : i32
    %c0_i32_1 = arith.constant 0 : i32
    return %c0_i32, %c0_i32_0 : i32, i32
  }
  func.func @transform_7(%arg0: i32) -> (i32, i32) {
    %c0_i32 = arith.constant 0 : i32
    %c0_i32_0 = arith.constant 0 : i32
    %c0_i32_1 = arith.constant 0 : i32
    return %c0_i32, %c0_i32_0 : i32, i32
  }
  func.func @transform_8(%arg0: i32) -> (i32, i32) {
    %c0_i32 = arith.constant 0 : i32
    %c0_i32_0 = arith.constant 0 : i32
    %c0_i32_1 = arith.constant 0 : i32
    return %c0_i32, %c0_i32_0 : i32, i32
  }
}

</mosaic_0001>

<bundles_post_ra>
// kernel: tpu_custom_call.1
= control target key start
LH: loop header
LB: loop body
LE: loop exit
PB: predicated region body
PF: predicated region fallthrough
CT: control target
= control target key end

     0   :  { %13 = vsyncpa [#allocation3], 0  ;;  %s1599_s0 = inlined_call_operand.hbm [shape: bf16[256,256], index: 0, kind: input, shape index: {}]   ;;  %s1600_s1 = inlined_call_operand.vmem [shape: bf16[4,256], index: 1, kind: input, shape index: {}]   ;;  %s1601_s2 = inlined_call_operand.vmem [shape: f32[1,256], index: 2, kind: input, shape index: {}]   ;;  %s1602_s3 = inlined_call_operand.vmem [shape: f32[8,4], index: 3, kind: input, shape index: {}]   ;;  %s1603_s4 = inlined_call_operand.vmem [shape: f32[8,12], index: 4, kind: input, shape index: {}]   ;;  %s1604_s5 = inlined_call_operand.vmem [shape: f32[8,12], index: 5, kind: input, shape index: {}]   ;;  %s1605_s6 = inlined_call_operand.vmem [shape: f32[8,4], index: 6, kind: input, shape index: {}]   ;;  %s1606_s7 = inlined_call_operand.vmem [shape: f32[8,1], index: 7, kind: input, shape index: {}]   ;;  %s1607_s8 = inlined_call_operand.hbm [shape: f32[8,256], index: 8, kind: output, shape index: {}]  }
   0x1   :  { %15 = vsyncpa [#allocation3 + $0x1], 0 }
   0x2   :  { %16 = vsyncpa [#allocation4], 0  ;;  %s1290_s27 = smov 0   ;;  %s1292_s28 = smov 0  }
   0x3   :  { %s1294_s29 = smov 0   ;;  %s1296_s30 = smov 0  }
   0x4 LB: > { %s1309_s9 = sadd.s32 4294967295, %s1225_s30   ;;  %s1312_s10 = sadd.s32 1, %s1225_s30   ;;  %s1225_s30 = sphi %s1296_s30, %s1615_s30   ;;  %s1221_s29 = sphi %s1294_s29, %s1614_s29   ;;  %s1217_s28 = sphi %s1292_s28, %s1613_s28   ;;  %s1213_s27 = sphi %s1290_s27, %s1612_s27  }
   0x5   : > { %s26_s11 = ssub.s32 %s1225_s30, %s1312_s10  ;;  %s29_s12 = sadd.s32 1, %s1221_s29 }
   0x6   : > { %p27_p0 = scmp.eq.s32.totalorder %s26_s11, 0  ;;  %p36_p1 = scmp.ne.s32.totalorder %s1221_s29, %s1217_s28 }
   0x7   : > { %p37_p2 = scmp.eq.s32.totalorder %s1225_s30, 0  ;;  %p42_p3 = scmp.ne.s32.totalorder %s1217_s28, %s1213_s27 }
   0x8   : > { %s1322_s13 = scalar_select %p27_p0, %s1221_s29, %s29_s12  }
   0x9   : > { %p38_p4 = por %p37_p2, %p36_p1  ;;  %p43_p5 = scmp.eq.s32.totalorder %s1309_s9, 0 }
   0xa   : > { %p1031_p6 = scmp.lt.s32.totalorder %s1225_s30, 2  ;;  %s257_s15 = sand.u32 1, %s1221_s29  }
   0xb   : > { %p1326_p7 = por %p43_p5, %p42_p3  ;;  %s950_s16 = sshll.u32 %s257_s15, 7 }
   0xc   : > { %s951_s17 = sshll.u32 %s1225_s30, 6  ;;  %s261_s21 = scalar_lea.vmem [#allocation2], %s950_s16 }
   0xd   : > { %s1609_s14 = scalar_select %p1326_p7, 1, 0 }
   0xe   : > { %s1335_s20 = scalar_lea.hbm %s1599_s0, %s951_s17  ;;  %s267_s22 = sshll.u32 %s261_s21, 4  ;;  %s1337_s22 = int_to_ptr.vmem [resolvable:$true] %s267_s22 }
   0xf   : > { %p1339_p8 = pnand %p1031_p6, %p38_p4  ;;  %s1343_s24 = scalar_lea.sflag [#allocation3], %s257_s15 }
  0x10   : > { %s1135_s25 = scalar_lea.hbm %s1335_s20, 2048  ;;  %s1140_s11 = scalar_lea.hbm %s1599_s0, 4096 }
  0x11   : > { %p1136_p9 = scmp.ne.s32.totalorder %s1335_s20, %s1135_s25  ;;  %p1137_p10 = pneg %p1339_p8 }
  0x12   : > { %p1141_p13 = scmp.lt.s32.totalorder %s1335_s20, %s1599_s0  ;;  %p1142_p0 = scmp.lt.s32.totalorder %s1140_s11, %s1135_s25 }
  0x13   : > { %p1138_p11 = pnand %p1137_p10, %p1136_p9 }
  0x14   : > { %p1143_p1 = por %p1142_p0, %p1141_p13 }
  0x15   : > { %p1139_p12 = pneg %p1138_p11 }
  0x17   : > { %p1144_p2 = pnand %p1143_p1, %p1139_p12 }
  0x19   : > { %1147 = shalt.err (!%p1144_p2)
}
  0x1a   : > { %s1148_s15 = scalar_lea.vmem %s1337_s22, 2048  ;;  %s1227_s17 = smov [#allocation2]  }
  0x1b   : > { %p1149_p3 = scmp.ne.s32.totalorder %s1337_s22, %s1148_s15  ;;  %s1153_s18 = sshll.u32 %s1227_s17, 4  ;;  %s1154_s18 = int_to_ptr.vmem [resolvable:$false] %s1153_s18 }
  0x1c   : > { %s1155_s19 = scalar_lea.vmem %s1154_s18, 4096  ;;  %p1156_p6 = scmp.lt.s32.totalorder %s1337_s22, %s1154_s18 }
  0x1d   : > { %p1151_p4 = pnand %p1149_p3, %p1137_p10  ;;  %p1157_p9 = scmp.lt.s32.totalorder %s1155_s19, %s1148_s15 }
  0x1f   : > { %p1152_p5 = pneg %p1151_p4  ;;  %p1158_p11 = por %p1157_p9, %p1156_p6 }
  0x21   : > { %p1159_p7 = pnand %p1158_p11, %p1152_p5 }
  0x23   : > { %1162 = shalt.err (!%p1159_p7)
}
  0x24   : > { %s1228_s21 = smov 128   ;;  %s1229_s25 = smov 64  }
  0x25   : > { %s1230_s26 = smov 4   ;;  %p952_p10 = scmp.ge.s32.totalorder %s1225_s30, 1 }
  0x26   : > { %1030 = dma.hbm_to_vmem [thread:$0]  (!%p1339_p8), %s1335_s20, 2048, %s1337_s22, %s1343_s24, %s1228_s21, %s1229_s25, %s1230_s26  }
  0x27   : > { %p281_p12 = scmp.lt.s32.totalorder %s1225_s30, 3 }
  0x29   : > { %p282_p13 = pnand %p952_p10, %p281_p12 }
  0x2a   : > { %s287_s27 = sand.u32 (!%p282_p13), 1, %s1217_s28   ;;  %p1611_p7 = scmp.ne.s32.totalorder (!%p282_p13), %s1609_s14, 0 }
  0x2b   : > { %285 = sbr.rel (%p282_p13) target bundleno = 636 (0x27c), region = 52  ;;  %s953_s11 = sshll.u32 (!%p282_p13), %s287_s27, 7 }
  0x2c   : > { %s288_s12 = scalar_lea.sflag (!%p282_p13), [#allocation3], %s287_s27  ;;  %s1367_s16 = scalar_lea.vmem (!%p282_p13), [#allocation2], %s953_s11 }
  0x30   : > { %1204 = dma.done.wait (%p1611_p7), %s288_s12, 2048  }
  0x31   : > { %1206 = vsyncadd (%p1611_p7), %s288_s12, 4294965248  ;;  %v1231_v0 = vmov 2   ;;  %v1232_v1 = vmov 0   ;;  %v513_v2 = vld [vmem:[%s1602_s3] sm:$0xff]  ;;  %v1110_v3 = vld [vmem:[%s1367_s16 + $0x78] sm:$0xff]   ;;  %v1233_v8 = vmov 3  }
  0x32   : > { %1084 = vset.pattern.permute.xlu1 %v1231_v0  ;;  %1083 = vset.pattern.permute.xlu0 %v1232_v1  ;;  %v1111_v4 = vld [vmem:[%s1367_s16 + $0x38] sm:$0xff]   ;;  %v1383_v5 = vld [vmem:[%s1604_s5] sm:$0xff]  ;;  %v1112_v6 = vld [vmem:[%s1367_s16 + $0x70] sm:$0xff]   ;;  %v1234_v12 = vmov 1   ;;  %v1235_v19 = vmov 6   ;;  %v1236_v23 = vmov 7  }
  0x33   : > { %672 = vperm.xlu1 %1084, %v513_v2   ;;  %516 = vperm.xlu0 %1083, %v513_v2   ;;  %v1113_v7 = vld [vmem:[%s1367_s16 + $0x30] sm:$0xff]   ;;  %v1114_v9 = vld [vmem:[%s1367_s16 + $0x68] sm:$0xff]   ;;  %v1393_v10 = vld [vmem:[%s1603_s4] sm:$0xff]  ;;  %v1237_v24 = vmov 4   ;;  %v1238_v28 = vmov 10   ;;  %v1239_v29 = vmov 8  }
  0x34   : > { %981 = vmatprep.subr.bf16.mxu0 %v1110_v3  ;;  %1003 = vmatprep.subr.bf16.mxu1 %v1110_v3  ;;  %v1115_v11 = vld [vmem:[%s1367_s16 + $0x28] sm:$0xff]   ;;  %v1116_v13 = vld [vmem:[%s1367_s16 + $0x60] sm:$0xff]   ;;  %v1118_v15 = vld [vmem:[%s1367_s16 + $0x58] sm:$0xff]   ;;  %v1240_v30 = vmov 11   ;;  %v1241_v31 = vmov 9   ;;  %v1242_v33 = vmov 5  }
  0x35   : > { %982 = vmatpush3.bf16.msra.mxu0 %v1111_v4  ;;  %1004 = vmatpush3.bf16.xpose.msra.mxu1 %v1111_v4  ;;  %v1117_v14 = vld [vmem:[%s1367_s16 + $0x20] sm:$0xff]   ;;  %v1119_v16 = vld [vmem:[%s1367_s16 + $0x18] sm:$0xff]   ;;  %v1120_v17 = vld [vmem:[%s1367_s16 + $0x50] sm:$0xff]   ;;  %p322_p8 = scmp.lt.s32.totalorder %s1309_s9, 1  ;;  %p976_p0 = scmp.ne.s32.totalorder %s1309_s9, 0 }
  0x36   : > { %983 = vmatprep.subr.bf16.mxu0 %v1112_v6  ;;  %1005 = vmatprep.subr.bf16.mxu1 %v1112_v6  ;;  %v954_v18 = vld.sshfl [vmem:[%s1600_s1] sm:$0x33 pattern:$0x76325410]  ;;  %v1121_v21 = vld [vmem:[%s1367_s16 + $0x10] sm:$0xff]   ;;  %v1122_v22 = vld [vmem:[%s1367_s16 + $0x48] sm:$0xff]  }
  0x37   : > { %1085 = vset.pattern.permute.xlu1 %v1233_v8  ;;  %543 = vperm.xlu0 %1083, %v1383_v5   ;;  %v367_v20 = vcombine.high %v954_v18, %v954_v18  ;;  %v1123_v25 = vld [vmem:[%s1367_s16 + $0x8] sm:$0xff]   ;;  %v1124_v26 = vld [vmem:[%s1367_s16 + $0x40] sm:$0xff]   ;;  %s323_s21 = scalar_select %p322_p8, %s1309_s9, 1 }
  0x38   : > { %747 = vperm.xlu1 %1085, %v513_v2   ;;  %v1125_v27 = vld [vmem:[%s1367_s16] sm:$0xff]  }
  0x39   : > { %984 = vmatpush3.bf16.msra.mxu0 %v1113_v7  ;;  %498 = vmatprep.mubr.bf16.mxu0 %v367_v20  ;;  %v583_v32 = vld [vmem:[%s1605_s6] sm:$0xff]  ;;  %s324_s27 = scalar_lea.vmem %s1601_s2, %s323_s21 }
  0x3a   : > { %985 = vmatprep.subr.bf16.mxu0 %v1114_v9  ;;  %v971_v41 = vld [vmem:[%s324_s27] ss:$0 sm:$0xff] }
  0x3b   : > { %1087 = vset.pattern.permute.xlu0 %v1234_v12 }
  0x3c   : > { %1086 = vset.pattern.permute.xlu1 %v1232_v1  ;;  %597 = vperm.xlu0 %1087, %v513_v2  }
  0x3d   : > { %536 = vperm.xlu1 %1086, %v1393_v10   ;;  %986 = vmatpush3.bf16.msra.mxu0 %v1115_v11 }
  0x3e   : > { %1006 = vmatpush3.bf16.xpose.msra.mxu1 %v1113_v7  ;;  %987 = vmatprep.subr.bf16.mxu0 %v1116_v13 }
  0x3f   : > { %1007 = vmatprep.subr.bf16.mxu1 %v1114_v9 }
  0x40   : > { %554 = vperm.xlu0 %1087, %v1393_v10  }
  0x41   : > { %1088 = vset.pattern.permute.xlu1 %v1233_v8  ;;  %988 = vmatpush3.bf16.msra.mxu0 %v1117_v14 }
  0x42   : > { %615 = vperm.xlu1 %1088, %v1393_v10   ;;  %989 = vmatprep.subr.bf16.mxu0 %v1118_v15 }
  0x44   : > { %1091 = vset.pattern.permute.xlu0 %v1235_v19 }
  0x45   : > { %695 = vperm.xlu0 %1091, %v1383_v5   ;;  %990 = vmatpush3.bf16.msra.mxu0 %v1119_v16 }
  0x46   : > { %620 = vperm.xlu1 %1088, %v1383_v5   ;;  %991 = vmatprep.subr.bf16.mxu0 %v1120_v17 }
  0x47   : > { %1008 = vmatpush3.bf16.xpose.msra.mxu1 %v1115_v11 }
  0x48   : > { %1009 = vmatprep.subr.bf16.mxu1 %v1116_v13 }
  0x49   : > { %1094 = vset.pattern.permute.xlu0 %v1236_v23  ;;  %992 = vmatpush3.bf16.msra.mxu0 %v1121_v21 }
  0x4a   : > { %1089 = vset.pattern.permute.xlu1 %v1237_v24  ;;  %706 = vperm.xlu0 %1094, %v1393_v10  }
  0x4b   : > { %631 = vperm.xlu1 %1089, %v1393_v10   ;;  %993 = vmatprep.subr.bf16.mxu0 %v1122_v22 }
  0x4d   : > { %994 = vmatpush3.bf16.msra.mxu0 %v1123_v25 }
  0x4e   : > { %1096 = vset.pattern.permute.xlu0 %v1231_v0  ;;  %995 = vmatprep.subr.bf16.mxu0 %v1124_v26 }
  0x4f   : > { %1090 = vset.pattern.permute.xlu1 %v1235_v19  ;;  %572 = vperm.xlu0 %1096, %v1393_v10  }
  0x50   : > { %690 = vperm.xlu1 %1090, %v1393_v10   ;;  %1010 = vmatpush3.bf16.xpose.msra.mxu1 %v1117_v14 }
  0x51   : > { %1011 = vmatprep.subr.bf16.mxu1 %v1118_v15  ;;  %996 = vmatpush3.bf16.msra.mxu0 %v1125_v27 }
  0x53   : > { %1099 = vset.pattern.permute.xlu0 %v1238_v28 }
  0x54   : > { %1092 = vset.pattern.permute.xlu1 %v1234_v12  ;;  %781 = vperm.xlu0 %1099, %v1393_v10  }
  0x55   : > { %560 = vperm.xlu1 %1092, %v1383_v5   ;;  %499 = vmatmul.mubr.bf16.vlgmr.msra.gmra.mxu0 %v954_v18 }
  0x58   : > { %1102 = vset.pattern.permute.xlu0 %v1239_v29  ;;  %1012 = vmatpush3.bf16.xpose.msra.mxu1 %v1119_v16 }
  0x59   : > { %1093 = vset.pattern.permute.xlu1 %v1237_v24  ;;  %724 = vperm.xlu0 %1102, %v1393_v10  }
  0x5a   : > { %637 = vperm.xlu1 %1093, %v1383_v5   ;;  %1013 = vmatprep.subr.bf16.mxu1 %v1120_v17 }
  0x5d   : > { %1105 = vset.pattern.permute.xlu0 %v1240_v30 }
  0x5e   : > { %1095 = vset.pattern.permute.xlu1 %v1241_v31  ;;  %799 = vperm.xlu0 %1105, %v1393_v10  }
  0x5f   : > { %765 = vperm.xlu1 %1095, %v1393_v10  }
  0x60   : > { %1014 = vmatpush3.bf16.xpose.msra.mxu1 %v1121_v21 }
  0x61   : > { %1015 = vmatprep.subr.bf16.mxu1 %v1122_v22 }
  0x62   : > { %805 = vperm.xlu0 %1105, %v1383_v5  }
  0x63   : > { %770 = vperm.xlu1 %1095, %v1383_v5  }
  0x66   : > { %1109 = vset.pattern.permute.xlu0 %v1233_v8 }
  0x67   : > { %1097 = vset.pattern.permute.xlu1 %v1242_v33  ;;  %811 = vperm.xlu0 %1109, %v583_v32  }
  0x68   : > { %649 = vperm.xlu1 %1097, %v1393_v10   ;;  %1016 = vmatpush3.bf16.xpose.msra.mxu1 %v1123_v25 }
  0x69   : > { %1017 = vmatprep.subr.bf16.mxu1 %v1124_v26 }
  0x6c   : > { %1098 = vset.pattern.permute.xlu1 %v1236_v23 }
  0x6d   : > { %712 = vperm.xlu1 %1098, %v1383_v5  }
  0x70   : > { %1018 = vmatpush3.bf16.xpose.msra.mxu1 %v1125_v27 }
  0x71   : > { %1100 = vset.pattern.permute.xlu1 %v1231_v0 }
  0x72   : > { %578 = vperm.xlu1 %1100, %v1383_v5  }
  0x76   : > { %1101 = vset.pattern.permute.xlu1 %v1242_v33 }
  0x77   : > { %655 = vperm.xlu1 %1101, %v1383_v5  }
  0x7b   : > { %1103 = vset.pattern.permute.xlu1 %v1238_v28 }
  0x7c   : > { %787 = vperm.xlu1 %1103, %v1383_v5  }
  0x80   : > { %1104 = vset.pattern.permute.xlu1 %v1239_v29 }
  0x81   : > { %730 = vperm.xlu1 %1104, %v1383_v5  }
  0x85   : > { %1106 = vset.pattern.permute.xlu1 %v1232_v1 }
  0x86   : > { %586 = vperm.xlu1 %1106, %v583_v32  }
  0x8a   : > { %1107 = vset.pattern.permute.xlu1 %v1234_v12 }
  0x8b   : > { %661 = vperm.xlu1 %1107, %v583_v32  }
  0x8f   : > { %1108 = vset.pattern.permute.xlu1 %v1231_v0 }
  0x90   : > { %736 = vperm.xlu1 %1108, %v583_v32  }
  0xae   : > { %v673_v34 = vpop.permute.xlu1 %672  ;;  %v517_v39 = vpop.permute.xlu0 %516 }
  0xaf   : > { %v519_v43 = vmul.f32 %v971_v41, %v517_v39  ;;  %v1466_v49 = vmul.f32 %v971_v41, %v673_v34 }
  0xb1   : > { %v520_v45 = vmul.f32 %v519_v43, %v519_v43  ;;  %v676_v53 = vmul.f32 %v1466_v49, %v1466_v49  ;;  %v530_v10 = vadd.f32 %v519_v43, %v519_v43  ;;  %vm526_vm0 = vcmp.gt.f32.partialorder %v519_v43, 1e-05 }
  0xb2   : > { %v1458_v42 = vpop.permute.xlu0 %543  ;;  %v686_v30 = vadd.f32 %v1466_v49, %v1466_v49  ;;  %vm682_vm3 = vcmp.gt.f32.partialorder %v1466_v49, 1e-05 }
  0xb3   : > { %v748_v35 = vpop.permute.xlu1 %747  ;;  %v521_v50 = vadd.f32 1.0, %v520_v45  ;;  %v677_v57 = vadd.f32 1.0, %v676_v53  ;;  %v972_v9 = vadd.f32 -1.0, %v520_v45  ;;  %v974_v29 = vadd.f32 -1.0, %v676_v53 }
  0xb4   : > { %v1464_v48 = vmul.f32 %v971_v41, %v748_v35 }
  0xb5   : > { %1126 = vrcp.f32 %v521_v50 }
  0xb6   : > { %v751_v52 = vmul.f32 %v1464_v48, %v1464_v48  ;;  %v761_v23 = vadd.f32 %v1464_v48, %v1464_v48  ;;  %vm757_vm1 = vcmp.gt.f32.partialorder %v1464_v48, 1e-05 }
  0xb7   : > { %v598_v46 = vpop.permute.xlu0 %597 }
  0xb8   : > { %v1445_v36 = vpop.permute.xlu1 %536  ;;  %v1468_v51 = vmul.f32 %v971_v41, %v598_v46  ;;  %v752_v56 = vadd.f32 1.0, %v751_v52  ;;  %v975_v22 = vadd.f32 -1.0, %v751_v52 }
  0xba   : > { %v601_v55 = vmul.f32 %v1468_v51, %v1468_v51  ;;  %1128 = vrcp.f32 %v752_v56  ;;  %v611_v24 = vadd.f32 %v1468_v51, %v1468_v51  ;;  %vm607_vm2 = vcmp.gt.f32.partialorder %v1468_v51, 1e-05 }
  0xbb   : > { %1130 = vrcp.f32 %v677_v57  ;;  %v1484_v0 = vpop.permute.xlu0 %554 }
  0xbc   : > { %v602_v58 = vadd.f32 1.0, %v601_v55  ;;  %v973_v28 = vadd.f32 -1.0, %v601_v55 }
  0xbd   : > { %v1447_v37 = vpop.permute.xlu1 %615 }
  0xbe   : > { %1132 = vrcp.f32 %v602_v58 }
  0xc0   : > { %v696_v12 = vpop.permute.xlu0 %695 }
  0xc1   : > { %v1450_v38 = vpop.permute.xlu1 %620 }
  0xc2   : > { %v1127_v61 = vpop.eup %1126 }
  0xc3   : > { %v523_v62 = vmul.f32 %v1127_v61, %v521_v50 }
  0xc5   : > { %v524_v3 = vsub.f32 2.0, %v523_v62  ;;  %v1490_v20 = vpop.permute.xlu0 %706 }
  0xc6   : > { %v1456_v40 = vpop.permute.xlu1 %631 }
  0xc7   : > { %v1129_v1 = vpop.eup %1128  ;;  %v525_v8 = vmul.f32 %v1127_v61, %v524_v3 }
  0xc8   : > { %v1131_v2 = vpop.eup %1130  ;;  %v754_v5 = vmul.f32 %v1129_v1, %v752_v56 }
  0xc9   : > { %v679_v6 = vmul.f32 %v1131_v2, %v677_v57  ;;  %v528_v15 = vmul.f32 %v972_v9, %v525_v8  ;;  %v531_v16 = vmul.f32 %v530_v10, %v525_v8 }
  0xca   : > { %v755_v13 = vsub.f32 2.0, %v754_v5  ;;  %v1508_v46 = vpop.permute.xlu0 %572 }
  0xcb   : > { %v1460_v44 = vpop.permute.xlu1 %690  ;;  %v1133_v4 = vpop.eup %1132  ;;  %v680_v14 = vsub.f32 2.0, %v679_v6  ;;  %v1496_v25 = vsel %vm526_vm0, %v528_v15, -0.41614684  ;;  %v1498_v26 = vsel %vm526_vm0, %v531_v16, 0.9092974 }
  0xcc   : > { %v604_v11 = vmul.f32 %v1133_v4, %v602_v58  ;;  %v756_v19 = vmul.f32 %v1129_v1, %v755_v13  ;;  %v548_v35 = vmul.f32 %v1496_v25, %v1496_v25  ;;  %v549_v39 = vmul.f32 %v1498_v26, %v1498_v26 }
  0xcd   : > { %v681_v21 = vmul.f32 %v1131_v2, %v680_v14  ;;  %v551_v50 = vmul.f32 %v1498_v26, %v1496_v25  ;;  %v546_v58 = vmul.f32 %v1458_v42, %v1498_v26  ;;  %v539_v51 = vmul.f32 %v1445_v36, %v1496_v25 }
  0xce   : > { %v605_v17 = vsub.f32 2.0, %v604_v11  ;;  %v759_v31 = vmul.f32 %v975_v22, %v756_v19  ;;  %v762_v32 = vmul.f32 %v761_v23, %v756_v19  ;;  %v550_v57 = vsub.f32 %v548_v35, %v549_v39 }
  0xcf   : > { %v684_v33 = vmul.f32 %v974_v29, %v681_v21  ;;  %v687_v34 = vmul.f32 %v686_v30, %v681_v21  ;;  %v552_v62 = vadd.f32 %v551_v50, %v551_v50  ;;  %v782_v42 = vpop.permute.xlu0 %781  ;;  %v590_v11 = vlaneseq }
  0xd0   : > { %v1462_v47 = vpop.permute.xlu1 %560  ;;  %v606_v27 = vmul.f32 %v1133_v4, %v605_v17  ;;  %v1515_v52 = vsel %vm757_vm1, %v759_v31, -0.41614684  ;;  %v1517_v53 = vsel %vm757_vm1, %v762_v32, 0.9092974  ;;  %v557_v36 = vmul.f32 %v1484_v0, %v550_v57 }
  0xd1   : > { %v1519_v55 = vsel %vm682_vm3, %v684_v33, -0.41614684  ;;  %v1521_v56 = vsel %vm682_vm3, %v687_v34, 0.9092974  ;;  %v775_v49 = vmul.f32 %v1515_v52, %v1515_v52  ;;  %v776_v1 = vmul.f32 %v1517_v53, %v1517_v53 }
  0xd2   : > { %v609_v43 = vmul.f32 %v973_v28, %v606_v27  ;;  %v612_v45 = vmul.f32 %v611_v24, %v606_v27  ;;  %v700_v3 = vmul.f32 %v1519_v55, %v1519_v55  ;;  %v701_v4 = vmul.f32 %v1521_v56, %v1521_v56 }
  0xd3   : > { %v778_v5 = vmul.f32 %v1517_v53, %v1515_v52  ;;  %v703_v9 = vmul.f32 %v1521_v56, %v1519_v55  ;;  %v547_v13 = vsub.f32 %v539_v51, %v546_v58  ;;  %v565_v14 = vmul.f32 %v550_v57, %v1496_v25 }
  0xd4   : > { %v610_v48 = vsel %vm607_vm2, %v609_v43, -0.41614684  ;;  %v613_v61 = vsel %vm607_vm2, %v612_v45, 0.9092974  ;;  %v566_v15 = vmul.f32 %v552_v62, %v1498_v26  ;;  %v777_v16 = vsub.f32 %v775_v49, %v776_v1  ;;  %v725_v31 = vpop.permute.xlu0 %724 }
  0xd5   : > { %v1474_v54 = vpop.permute.xlu1 %637  ;;  %v625_v6 = vmul.f32 %v610_v48, %v610_v48  ;;  %v626_v8 = vmul.f32 %v613_v61, %v613_v61  ;;  %v628_v10 = vmul.f32 %v613_v61, %v610_v48  ;;  %v698_v17 = vmul.f32 %v696_v12, %v1521_v56 }
  0xd6   : > { %v702_v19 = vsub.f32 %v700_v3, %v701_v4  ;;  %v693_v21 = vmul.f32 %v1460_v44, %v1519_v55  ;;  %v779_v0 = vadd.f32 %v778_v5, %v778_v5  ;;  %v618_v22 = vmul.f32 %v1447_v37, %v610_v48 }
  0xd7   : > { %v558_v23 = vadd.f32 %v557_v36, %v547_v13  ;;  %v627_v24 = vsub.f32 %v625_v6, %v626_v8  ;;  %v623_v29 = vmul.f32 %v1450_v38, %v613_v61  ;;  %v563_v30 = vmul.f32 %v1462_v47, %v552_v62 }
  0xd8   : > { %v704_v32 = vadd.f32 %v703_v9, %v703_v9  ;;  %v629_v12 = vadd.f32 %v628_v10, %v628_v10  ;;  %v567_v33 = vsub.f32 %v565_v14, %v566_v15  ;;  %v792_v34 = vmul.f32 %v777_v16, %v1515_v52 }
  0xd9   : > { %v642_v37 = vmul.f32 %v627_v24, %v610_v48  ;;  %v793_v35 = vmul.f32 %v779_v0, %v1517_v53  ;;  %v569_v43 = vmul.f32 %v550_v57, %v1498_v26  ;;  %v709_v38 = vmul.f32 %v1490_v20, %v702_v19  ;;  %v800_v26 = vpop.permute.xlu0 %799 }
  0xda   : > { %v1478_v59 = vpop.permute.xlu1 %765  ;;  %v643_v39 = vmul.f32 %v629_v12, %v613_v61  ;;  %v699_v47 = vsub.f32 %v693_v21, %v698_v17  ;;  %v717_v45 = vmul.f32 %v702_v19, %v1519_v55  ;;  %v634_v58 = vmul.f32 %v1456_v40, %v627_v24 }
  0xdb   : > { %v768_v44 = vmul.f32 %v1478_v59, %v1515_v52  ;;  %v718_v51 = vmul.f32 %v704_v32, %v1521_v56  ;;  %v645_v49 = vmul.f32 %v629_v12, %v610_v48  ;;  %v646_v59 = vmul.f32 %v627_v24, %v613_v61 }
  0xdc   : > { %v624_v1 = vsub.f32 %v618_v22, %v623_v29  ;;  %v784_v3 = vmul.f32 %v782_v42, %v777_v16  ;;  %v564_v4 = vsub.f32 %v558_v23, %v563_v30  ;;  %v794_v57 = vsub.f32 %v792_v34, %v793_v35 }
  0xdd   : > { %v644_v20 = vsub.f32 %v642_v37, %v643_v39  ;;  %v720_v40 = vmul.f32 %v704_v32, %v1519_v55  ;;  %v721_v9 = vmul.f32 %v702_v19, %v1521_v56  ;;  %v719_v61 = vsub.f32 %v717_v45, %v718_v51  ;;  %v806_v24 = vpop.permute.xlu0 %805 }
  0xde   : > { %v1480_v60 = vpop.permute.xlu1 %770  ;;  %v635_v48 = vadd.f32 %v634_v58, %v624_v1  ;;  %v640_v42 = vmul.f32 %v1474_v54, %v629_v12  ;;  %v647_v10 = vadd.f32 %v646_v59, %v645_v49  ;;  %v710_v13 = vadd.f32 %v709_v38, %v699_v47 }
  0xdf   : > { %v773_v27 = vmul.f32 %v1480_v60, %v1517_v53  ;;  %v568_v60 = vmul.f32 %v552_v62, %v1496_v25  ;;  %v575_v25 = vmul.f32 %v1508_v46, %v567_v33  ;;  %v796_v46 = vmul.f32 %v777_v16, %v1517_v53 }
  0xe0   : > { %v591_v17 = vshrl.u32 %v590_v11, 7  ;;  %v722_v22 = vadd.f32 %v721_v9, %v720_v40  ;;  %v727_v19 = vmul.f32 %v725_v31, %v719_v61  ;;  %v641_v23 = vsub.f32 %v635_v48, %v640_v42 }
  0xe1   : > { %v774_v50 = vsub.f32 %v768_v44, %v773_v27  ;;  %v570_v62 = vadd.f32 %v569_v43, %v568_v60  ;;  %v576_v53 = vadd.f32 %v575_v25, %v564_v4 }
  0xe2   : > { %v592_v30 = vsub.s32 0, %v591_v17  ;;  %v742_v11 = vsub.s32 2, %v591_v17  ;;  %v817_v31 = vsub.s32 3, %v591_v17  ;;  %v812_v45 = vpop.permute.xlu0 %811 }
  0xe3   : > { %v1482_v63 = vpop.permute.xlu1 %649  ;;  %v785_v8 = vadd.f32 %v784_v3, %v774_v50 }
  0xe4   : > { %v652_v15 = vmul.f32 %v1482_v63, %v644_v20  ;;  %v667_v63 = vsub.s32 1, %v591_v17 }
  0xe6   : > { %v653_v29 = vadd.f32 %v652_v15, %v641_v23 }
  0xe8   : > { %v1486_v7 = vpop.permute.xlu1 %712 }
  0xe9   : > { %v715_v6 = vmul.f32 %v1486_v7, %v704_v32  ;;  %v802_v7 = vmul.f32 %v800_v26, %v794_v57 }
  0xeb   : > { %v716_v21 = vsub.f32 %v710_v13, %v715_v6 }
  0xed   : > { %v1488_v18 = vpop.permute.xlu1 %578  ;;  %v728_v33 = vadd.f32 %v727_v19, %v716_v21 }
  0xee   : > { %v581_v55 = vmul.f32 %v1488_v18, %v570_v62 }
  0xf0   : > { %v582_v12 = vsub.f32 %v576_v53, %v581_v55 }
  0xf2   : > { %v1506_v41 = vpop.permute.xlu1 %655 }
  0xf3   : > { %v658_v54 = vmul.f32 %v1506_v41, %v647_v10 }
  0xf5   : > { %v659_v34 = vsub.f32 %v653_v29, %v658_v54 }
  0xf7   : > { %v788_v2 = vpop.permute.xlu1 %787 }
  0xf8   : > { %v790_v5 = vmul.f32 %v788_v2, %v779_v0  ;;  %v795_v2 = vmul.f32 %v779_v0, %v1515_v52 }
  0xfa   : > { %v791_v14 = vsub.f32 %v785_v8, %v790_v5  ;;  %v797_v27 = vadd.f32 %v796_v46, %v795_v2 }
  0xfc   : > { %v731_v28 = vpop.permute.xlu1 %730  ;;  %v803_v0 = vadd.f32 %v802_v7, %v791_v14  ;;  %v808_v32 = vmul.f32 %v806_v24, %v797_v27 }
  0xfd   : > { %v733_v52 = vmul.f32 %v731_v28, %v722_v22 }
  0xfe   : > { %v809_v37 = vsub.f32 %v803_v0, %v808_v32 }
  0xff   : > { %v734_v41 = vsub.f32 %v728_v33, %v733_v52 }
 0x100   : > { %v814_v1 = vadd.f32 %v812_v45, %v809_v37 }
 0x101   : > { %v587_v36 = vpop.permute.xlu1 %586 }
 0x102   : > { %v589_v35 = vadd.f32 %v587_v36, %v582_v12 }
 0x106   : > { %v662_v56 = vpop.permute.xlu1 %661 }
 0x107   : > { %v664_v28 = vadd.f32 %v662_v56, %v659_v34 }
 0x10b   : > { %v737_v39 = vpop.permute.xlu1 %736 }
 0x10c   : > { %v739_v58 = vadd.f32 %v737_v39, %v734_v41 }
 0x115   : > { %v997_v16 = vpop.f32.mrf.mxu0 }
 0x117   : > { %v998_v18 = vpop.f32.mrf.mxu0 }
 0x118   : > { %v999_v44 = vadd.f32 %v998_v18, %v997_v16 }
 0x119   : > { %v1000_v60 = vpop.f32.mrf.mxu0 }
 0x11a   : > { %v593_v43 = vrot.slane %v999_v44, %v592_v30  ;;  %v668_v38 = vrot.slane %v999_v44, %v667_v63  ;;  %v743_v47 = vrot.slane %v999_v44, %v742_v11  ;;  %v818_v59 = vrot.slane %v999_v44, %v817_v31 }
 0x11b   : > { %v1001_v50 = vpop.f32.mrf.mxu0 }
 0x11c   : > { %v594_v51 = vmul.f32 %v593_v43, %v589_v35  ;;  %v669_v49 = vmul.f32 %v668_v38, %v664_v28  ;;  %v744_v4 = vmul.f32 %v743_v47, %v739_v58  ;;  %v819_v25 = vmul.f32 %v818_v59, %v814_v1 }
 0x11e   : > { %v670_v3 = vadd.f32 %v669_v49, %v594_v51 }
 0x120   : > { %v745_v5 = vadd.f32 %v744_v4, %v670_v3 }
 0x122   : > { %v820_v26 = vadd.f32 %v819_v25, %v745_v5 }
 0x124   : > { %v821_v36 = vpack.c.bf16 %v820_v26, %v820_v26 }
 0x126   : > { %1019 = vmatprep.mubr.bf16.mxu1 %v821_v36 }
 0x127   : > { %1020 = vmatmul.mubr.bf16.vlgmr.msra.gmra.mxu1 %v821_v36 }
 0x1e7   : > { %v856_v57 = vpop.f32.mrf.mxu1 }
 0x1e9   : > { %v858_v20 = vpop.f32.mrf.mxu1  ;;  %866 = sbr.rel (%p976_p0) target bundleno = 621 (0x26d), region = 60 }
 0x1eb   : > { %v860_v62 = vpop.f32.mrf.mxu1 }
 0x1ed   : > { %v861_v6 = vpop.f32.mrf.mxu1 }
 0x1ee   : > { %v867_v8 = vld [vmem:[%s1606_s7] sm:$0xff]  ;;  %v1243_v40 = vmov 0  }
 0x1ef   : > { %1134 = vset.pattern.permute.xlu0 %v1243_v40 }
 0x1f0   : > { %870 = vperm.xlu0 %1134, %v867_v8  }
 0x26b   : > { %v871_v9 = vpop.permute.xlu0 %870 }
 0x26c   : > { %873 = vst [vmem:[#allocation5] sm:$0xff] %v871_v9  ;;  %874 = vst [vmem:[#allocation5 + $0x8] sm:$0xff] %v871_v9 }
 0x26d PF: > { %p1032_p1 = scmp.eq.s32.totalorder %s1309_s9, 1  ;;  %s1244_s16 = smov [#allocation5]  }
 0x26e   : > { %s888_s30 = sshll.u32 %s1244_s16, 4  ;;  %s889_s30 = int_to_ptr.vmem [resolvable:$true] %s888_s30 }
 0x26f   : > { %s1163_s20 = scalar_lea.vmem %s889_s30, 256  ;;  %p1170_p5 = scmp.lt.s32.totalorder %s889_s30, %s889_s30 }
 0x270   : > { %p1164_p2 = scmp.ne.s32.totalorder %s889_s30, %s1163_s20  ;;  %p1171_p6 = scmp.lt.s32.totalorder %s1163_s20, %s1163_s20 }
 0x272   : > { %p1165_p3 = pnand %p1164_p2, %p1032_p1  ;;  %p1172_p9 = por %p1171_p6, %p1170_p5 }
 0x273   : > { %v875_v48 = vld [vmem:[#allocation5] sm:$0xff]  ;;  %v876_v61 = vld [vmem:[#allocation5 + $0x8] sm:$0xff] }
 0x274   : > { %v877_v42 = vadd.f32 %v875_v48, %v856_v57  ;;  %v878_v10 = vadd.f32 %v876_v61, %v858_v20  ;;  %p1166_p4 = pneg %p1165_p3 }
 0x276   : > { %879 = vst [vmem:[#allocation5] sm:$0xff] %v877_v42  ;;  %880 = vst [vmem:[#allocation5 + $0x8] sm:$0xff] %v878_v10  ;;  %p1173_p11 = pnand %p1172_p9, %p1166_p4 }
 0x278   : > { %1176 = shalt.err (!%p1173_p11)
}
 0x279   : > { %1024 = dma.vmem_to_hbm [thread:$0]  (%p1032_p1), %s889_s30, 256, %s1607_s8, [#allocation4]  }
 0x27a   : > { %1208 = dma.done.wait (%p1032_p1), [#allocation4], 256  }
 0x27b   : > { %1210 = vsyncadd (%p1032_p1), [#allocation4], 4294967040 }
 0x27c PF: > { %p19_p10 = scmp.ge.s32.totalorder %s1312_s10, 4   ;;  %s1612_s27 = smov %s1217_s28 }
 0x27d   : > { %s1613_s28 = smov %s1221_s29  ;;  %s1614_s29 = smov %s1322_s13 }
 0x27e   : > { %s1615_s30 = smov %s1312_s10  ;;  %21 = sbr.rel (!%p19_p10) target bundleno = 4 (0x4), region = 96 }
 0x283   :  { %901 = vsyncpa [#allocation3], 1 }
 0x284   :  { %903 = vsyncpa [#allocation3 + $0x1], 1 }
 0x285   :  { %904 = vsyncpa [#allocation4], 1 }
 0x286   :  { %906 = vsyncpa [#allocation4 + $0x1], 1 }

</bundles_post_ra>
